<compile_context>
chip_gen: v7x
topology: tpu7x:2x2x1
jax: 0.10.0
libtpu: 0.0.40
codegen_flags: <defaults>
</compile_context>

<pallas_src>
import functools

import jax
import jax.numpy as jnp
from jax import lax
from jax.experimental import pallas as pl
from jax.experimental.pallas import tpu as pltpu


def _round_up(x: int, m: int) -> int:
    return (x + m - 1) // m * m


def fusion_kernel(n_valid, tile_n,
                  llm_ref, wpl_ref, bpl_ref, wc_ref, bc_ref, wf2_ref, bf2_ref,
                  sum_ref):
    """One row-tile of the folded PSSA forward; accumulates sum of sigmoid scores."""
    f32 = jnp.float32
    i = pl.program_id(0)

    @pl.when(i == 0)
    def _():
        sum_ref[...] = jnp.zeros_like(sum_ref)

    # PSSA.llm_projection: Linear + ReLU (dropout == identity in eval mode)
    llm_proj = jnp.maximum(
        jnp.dot(llm_ref[...], wpl_ref[...], preferred_element_type=f32)
        + bpl_ref[...], 0.0)                                          # [tile, H] f32

    # Folded chain: attended = out_proj(v_proj(llm_proj)) (softmax over one key
    # is 1.0), then fusion Linear(2H->H) on concat([attended, llm_proj]):
    #   h = relu(llm_proj @ (Wv@Wo@Wf1a + Wf1b) + ((bv@Wo + bo)@Wf1a + bf1))
    h = jnp.maximum(
        jnp.dot(llm_proj.astype(wc_ref.dtype), wc_ref[...],
                preferred_element_type=f32) + bc_ref[...], 0.0)       # [tile, H] f32

    # fusion Linear(H->1) + Sigmoid
    s = jax.nn.sigmoid(
        jnp.dot(h.astype(wf2_ref.dtype), wf2_ref[...],
                preferred_element_type=f32) + bf2_ref[...])           # [tile, 1] f32

    # Mask rows that exist only because N was rounded up to a multiple of tile_n.
    row = i * tile_n + lax.broadcasted_iota(jnp.int32, s.shape, 0)
    s = jnp.where(row < n_valid, s, 0.0)

    # Running sum; wrapper divides by N to get torch's .mean(dim=0).
    sum_ref[...] += jnp.sum(s, axis=0, keepdims=True)


def phishing_score_fusion(gnn_embeddings, edge_weights, time_weights,
                          llm_embeddings, params, *, tile_n=512):
    # gnn_embeddings and the gnn-projection weights (wg/bg, wpg/bpg) are
    # mathematically dead: with a single source position the attention query
    # path cannot influence any output.  They are accepted here to preserve
    # the module interface but are never DMA'd into the kernel.
    del gnn_embeddings

    N, llm_dim = llm_embeddings.shape
    hidden = params["wpl"].shape[1]

    # ---- offline weight folding (exact in real arithmetic) ------------------
    w_vo = params["wv"] @ params["wo"]                       # value -> out_proj
    b_vo = params["bv"] @ params["wo"] + params["bo"]
    w_c = w_vo @ params["wf1a"] + params["wf1b"]             # fold fusion(2H->H)
    b_c = b_vo @ params["wf1a"] + params["bf1"]

    bf16 = jnp.bfloat16
    f32 = jnp.float32

    tile = min(tile_n, _round_up(N, 8))
    n_pad = _round_up(N, tile)
    llm = llm_embeddings.astype(bf16)
    if n_pad != N:
        llm = jnp.pad(llm, ((0, n_pad - N), (0, 0)))

    args = (
        llm,                                                 # [n_pad, llm_dim] bf16
        params["wpl"].astype(bf16), params["bpl"].astype(f32),
        w_c.astype(bf16), b_c.astype(f32),
        params["wf2"].astype(bf16), params["bf2"].astype(f32),
    )

    resident = lambda i: (0, 0)   # weights/biases stay in VMEM across the grid
    in_specs = [
        pl.BlockSpec((tile, llm_dim), lambda i: (i, 0)),
        pl.BlockSpec((llm_dim, hidden), resident),
        pl.BlockSpec((1, hidden), resident),
        pl.BlockSpec((hidden, hidden), resident),
        pl.BlockSpec((1, hidden), resident),
        pl.BlockSpec((hidden, 1), resident),
        pl.BlockSpec((1, 1), resident),
    ]
    out_spec = pl.BlockSpec((1, 1), resident)   # resident (1,1) accumulator

    flops = 2 * n_pad * (llm_dim * hidden + hidden * hidden + hidden)
    bytes_accessed = sum(int(a.size) * a.dtype.itemsize for a in args) + 4

    score_sum = pl.pallas_call(
        functools.partial(fusion_kernel, N, tile),
        out_shape=jax.ShapeDtypeStruct((1, 1), f32),
        grid_spec=pltpu.PrefetchScalarGridSpec(
            num_scalar_prefetch=0,
            grid=(n_pad // tile,),
            in_specs=in_specs,
            out_specs=out_spec),
        compiler_params=pltpu.CompilerParams(
            # single grid axis carries the score reduction -> arbitrary
            dimension_semantics=("arbitrary",)),
        cost_estimate=pl.CostEstimate(
            flops=flops, transcendentals=n_pad, bytes_accessed=bytes_accessed),
    )(*args)

    final_score = (score_sum / jnp.float32(N)).reshape(1)    # torch .mean(dim=0) -> [1]
    # softmax over a single source position -> attention weights are all 1.0
    attention_weights = jnp.ones((N, 1, 1), f32)
    # TemporalWeighting: edge_weight * exp(-decay*age) — pure elementwise, fused by XLA
    temporal_weights = (edge_weights.reshape(N) * time_weights.reshape(N)).astype(f32)

    return {
        "final_score": final_score,
        "attention_weights": attention_weights,
        "temporal_weights": temporal_weights,
    }


def init_params(key, gnn_dim, llm_dim, hidden):
    """Mirrors the torch module's Linear layers; weights pre-transposed to [in, out]."""
    ks = jax.random.split(key, 20)

    def lin(kw, kb, din, dout):
        scale = 1.0 / jnp.sqrt(jnp.float32(din))
        w = jax.random.uniform(kw, (din, dout), jnp.float32, -scale, scale)
        b = jax.random.uniform(kb, (1, dout), jnp.float32, -scale, scale)
        return w, b

    p = {}
    # Dead-code params (query path / temporal reweighting): kept to mirror the
    # reference state dict, but they never reach the kernel.
    p["wg"], p["bg"] = lin(ks[0], ks[1], gnn_dim, hidden)     # outer gnn_projection
    p["wpg"], p["bpg"] = lin(ks[2], ks[3], hidden, hidden)    # PSSA.gnn_projection
    # Live params.
    p["wpl"], p["bpl"] = lin(ks[4], ks[5], llm_dim, hidden)   # PSSA.llm_projection
    p["wv"], p["bv"] = lin(ks[6], ks[7], hidden, hidden)      # MHA value projection
    p["wo"], p["bo"] = lin(ks[8], ks[9], hidden, hidden)      # MHA output projection
    wf1, bf1 = lin(ks[10], ks[11], 2 * hidden, hidden)        # fusion Linear(2H->H)
    p["wf1a"] = wf1[:hidden, :]      # multiplies `attended`   (concat order [attended, llm_proj])
    p["wf1b"] = wf1[hidden:, :]      # multiplies `llm_proj`
    p["bf1"] = bf1
    p["wf2"], p["bf2"] = lin(ks[12], ks[13], hidden, 1)       # fusion Linear(H->1)
    return p


if __name__ == "__main__":
    # Small shapes consistent with the module.  NOTE: the reference forward only
    # type-checks when gnn_dim == hidden_dim (PSSA.gnn_projection receives
    # already-projected embeddings), so we pick gnn_dim == hidden_dim.
    N = 8            # number of graph nodes / "batch"
    GNN_DIM = 128
    LLM_DIM = 128
    HIDDEN = 128
    DECAY = 0.1

    key = jax.random.PRNGKey(0)
    k_gnn, k_llm, k_edge, k_par = jax.random.split(key, 4)

    gnn_embeddings = jax.random.normal(k_gnn, (N, GNN_DIM), jnp.float32)
    llm_embeddings = jax.random.normal(k_llm, (N, LLM_DIM), jnp.float32)
    edge_weights = jax.random.uniform(k_edge, (N,), jnp.float32)

    # TODO(synk): datetime / ISO-timestamp parsing in
    # TemporalWeighting.calculate_time_weight has no Pallas equivalent; only the
    # resulting exp(-decay * age_in_days) weights enter the computation.
    ages_days = jnp.arange(N, dtype=jnp.float32)
    time_weights = jnp.exp(-DECAY * ages_days)

    params = init_params(k_par, GNN_DIM, LLM_DIM, HIDDEN)

    out = phishing_score_fusion(gnn_embeddings, edge_weights, time_weights,
                                llm_embeddings, params)
    jax.block_until_ready(out)

    # Pure-JAX f32 reference of the same (un-folded) forward pass for sanity.
    def ref_forward():
        llm_proj = jnp.maximum(llm_embeddings @ params["wpl"] + params["bpl"], 0.0)
        v = llm_proj @ params["wv"] + params["bv"]
        attended = v @ params["wo"] + params["bo"]          # softmax over 1 key == 1.0
        h = jnp.maximum(attended @ params["wf1a"] + llm_proj @ params["wf1b"]
                        + params["bf1"], 0.0)
        s = jax.nn.sigmoid(h @ params["wf2"] + params["bf2"])
        return jnp.mean(s, axis=0).reshape(1)

    ref_score = ref_forward()

    assert out["final_score"].shape == (1,)
    assert out["attention_weights"].shape == (N, 1, 1)
    assert out["temporal_weights"].shape == (N,)
    assert jnp.allclose(out["final_score"], ref_score, atol=2e-2), (
        out["final_score"], ref_score)
    assert jnp.allclose(out["temporal_weights"],
                        edge_weights * time_weights, atol=1e-6)
    print("KERNEL_OK")
</pallas_src>

<mosaic_0001>
module attributes {stable_mosaic.version = 11 : i64} {
  func.func @fusion_kernel(%arg0: i32, %arg1: memref<8x128xbf16, #tpu.memory_space<vmem>>, %arg2: memref<128x128xbf16, #tpu.memory_space<vmem>>, %arg3: memref<1x128xf32, #tpu.memory_space<vmem>>, %arg4: memref<128x128xbf16, #tpu.memory_space<vmem>>, %arg5: memref<1x128xf32, #tpu.memory_space<vmem>>, %arg6: memref<128x1xbf16, #tpu.memory_space<vmem>>, %arg7: memref<1x1xf32, #tpu.memory_space<vmem>>, %arg8: memref<1x1xf32, #tpu.memory_space<vmem>>) attributes {dimension_semantics = [#tpu.dimension_semantics<arbitrary>], iteration_bounds = array<i64: 1>, scalar_prefetch = 0 : i64, scratch_operands = 0 : i64, tpu.core_type = #tpu.core_type<tc>, window_params = [{transform_indices = @transform_0, window_bounds = array<i64: 8, 128>}, {pipeline_mode = #tpu.pipeline_mode<synchronous>, transform_indices = @transform_1, window_bounds = array<i64: 128, 128>}, {pipeline_mode = #tpu.pipeline_mode<synchronous>, transform_indices = @transform_2, window_bounds = array<i64: 1, 128>}, {pipeline_mode = #tpu.pipeline_mode<synchronous>, transform_indices = @transform_3, window_bounds = array<i64: 128, 128>}, {pipeline_mode = #tpu.pipeline_mode<synchronous>, transform_indices = @transform_4, window_bounds = array<i64: 1, 128>}, {pipeline_mode = #tpu.pipeline_mode<synchronous>, transform_indices = @transform_5, window_bounds = array<i64: 128, 1>}, {pipeline_mode = #tpu.pipeline_mode<synchronous>, transform_indices = @transform_6, window_bounds = array<i64: 1, 1>}, {pipeline_mode = #tpu.pipeline_mode<synchronous>, transform_indices = @transform_7, window_bounds = array<i64: 1, 1>}]} {
    %c0_i32 = arith.constant 0 : i32
    %0 = arith.cmpi eq, %arg0, %c0_i32 : i32
    %1 = arith.extui %0 : i1 to i32
    %c0_i32_0 = arith.constant 0 : i32
    %2 = arith.cmpi ne, %1, %c0_i32_0 : i32
    scf.if %2 {
      %cst_26 = arith.constant 0.000000e+00 : f32
      %43 = vector.broadcast %cst_26 : f32 to vector<1x1xf32>
      %c0_27 = arith.constant 0 : index
      %c0_28 = arith.constant 0 : index
      %44 = vector.load %arg8[%c0_27, %c0_28] : memref<1x1xf32, #tpu.memory_space<vmem>>, vector<1x1xf32>
      tpu.vector_store %arg8[%c0_27, %c0_28], %43 {strides = array<i32>} : memref<1x1xf32, #tpu.memory_space<vmem>>, vector<1x1xf32>,
    } else {
    }
    %c0 = arith.constant 0 : index
    %c0_1 = arith.constant 0 : index
    %3 = vector.load %arg1[%c0, %c0_1] : memref<8x128xbf16, #tpu.memory_space<vmem>>, vector<8x128xbf16>
    %c0_2 = arith.constant 0 : index
    %c0_3 = arith.constant 0 : index
    %4 = vector.load %arg2[%c0_2, %c0_3] : memref<128x128xbf16, #tpu.memory_space<vmem>>, vector<128x128xbf16>
    %cst = arith.constant dense<0.000000e+00> : vector<8x128xf32>
    %5 = tpu.matmul %3, %4, %cst {dimension_numbers = #tpu.dot_dimension_numbers<[1], [0], [0], [1], [0, 0, 1, 1], [], []>} : vector<8x128xbf16>, vector<128x128xbf16>, vector<8x128xf32> -> vector<8x128xf32>
    %c0_4 = arith.constant 0 : index
    %c0_5 = arith.constant 0 : index
    %6 = vector.load %arg3[%c0_4, %c0_5] : memref<1x128xf32, #tpu.memory_space<vmem>>, vector<1x128xf32>
    %7 = vector.broadcast %6 : vector<1x128xf32> to vector<8x128xf32>
    %8 = arith.addf %5, %7 : vector<8x128xf32>
    %cst_6 = arith.constant 0.000000e+00 : f32
    %9 = vector.broadcast %cst_6 : f32 to vector<8x128xf32>
    %10 = arith.maximumf %8, %9 : vector<8x128xf32>
    %11 = arith.truncf %10 : vector<8x128xf32> to vector<8x128xbf16>
    %c0_7 = arith.constant 0 : index
    %c0_8 = arith.constant 0 : index
    %12 = vector.load %arg4[%c0_7, %c0_8] : memref<128x128xbf16, #tpu.memory_space<vmem>>, vector<128x128xbf16>
    %cst_9 = arith.constant dense<0.000000e+00> : vector<8x128xf32>
    %13 = tpu.matmul %11, %12, %cst_9 {dimension_numbers = #tpu.dot_dimension_numbers<[1], [0], [0], [1], [0, 0, 1, 1], [], []>} : vector<8x128xbf16>, vector<128x128xbf16>, vector<8x128xf32> -> vector<8x128xf32>
    %c0_10 = arith.constant 0 : index
    %c0_11 = arith.constant 0 : index
    %14 = vector.load %arg5[%c0_10, %c0_11] : memref<1x128xf32, #tpu.memory_space<vmem>>, vector<1x128xf32>
    %15 = vector.broadcast %14 : vector<1x128xf32> to vector<8x128xf32>
    %16 = arith.addf %13, %15 : vector<8x128xf32>
    %cst_12 = arith.constant 0.000000e+00 : f32
    %17 = vector.broadcast %cst_12 : f32 to vector<8x128xf32>
    %18 = arith.maximumf %16, %17 : vector<8x128xf32>
    %19 = arith.truncf %18 : vector<8x128xf32> to vector<8x128xbf16>
    %c0_13 = arith.constant 0 : index
    %c0_14 = arith.constant 0 : index
    %20 = vector.load %arg6[%c0_13, %c0_14] : memref<128x1xbf16, #tpu.memory_space<vmem>>, vector<128x1xbf16>
    %cst_15 = arith.constant dense<0.000000e+00> : vector<8x1xf32>
    %21 = tpu.matmul %19, %20, %cst_15 {dimension_numbers = #tpu.dot_dimension_numbers<[1], [0], [0], [1], [0, 0, 1, 1], [], []>} : vector<8x128xbf16>, vector<128x1xbf16>, vector<8x1xf32> -> vector<8x1xf32>
    %c0_16 = arith.constant 0 : index
    %c0_17 = arith.constant 0 : index
    %22 = vector.load %arg7[%c0_16, %c0_17] : memref<1x1xf32, #tpu.memory_space<vmem>>, vector<1x1xf32>
    %23 = vector.broadcast %22 : vector<1x1xf32> to vector<8x1xf32>
    %24 = arith.addf %21, %23 : vector<8x1xf32>
    %25 = arith.negf %24 : vector<8x1xf32>
    %26 = math.exp %25 : vector<8x1xf32>
    %cst_18 = arith.constant 1.000000e+00 : f32
    %27 = vector.broadcast %cst_18 : f32 to vector<8x1xf32>
    %28 = arith.addf %27, %26 : vector<8x1xf32>
    %29 = arith.divf %27, %28 : vector<8x1xf32>
    %c8_i32 = arith.constant 8 : i32
    %30 = arith.muli %arg0, %c8_i32 : i32
    %31 = tpu.iota {dimensions = array<i32: 0>} : vector<8x1xi32>
    %32 = vector.broadcast %30 : i32 to vector<8x1xi32>
    %33 = arith.addi %32, %31 : vector<8x1xi32>
    %c8_i32_19 = arith.constant 8 : i32
    %34 = vector.broadcast %c8_i32_19 : i32 to vector<8x1xi32>
    %35 = arith.cmpi slt, %33, %34 : vector<8x1xi32>
    %cst_20 = arith.constant 0.000000e+00 : f32
    %36 = vector.broadcast %cst_20 : f32 to vector<8x1xf32>
    %37 = arith.select %35, %29, %36 : vector<8x1xi1>, vector<8x1xf32>
    %c0_21 = arith.constant 0 : index
    %c0_22 = arith.constant 0 : index
    %38 = vector.load %arg8[%c0_21, %c0_22] : memref<1x1xf32, #tpu.memory_space<vmem>>, vector<1x1xf32>
    %cst_23 = arith.constant dense<0.000000e+00> : vector<1xf32>
    %39 = vector.multi_reduction <add>, %37, %cst_23 [0] : vector<8x1xf32> to vector<1xf32>
    %40 = vector.shape_cast %39 : vector<1xf32> to vector<1x1xf32>
    %41 = arith.addf %38, %40 : vector<1x1xf32>
    %c0_24 = arith.constant 0 : index
    %c0_25 = arith.constant 0 : index
    %42 = vector.load %arg8[%c0_24, %c0_25] : memref<1x1xf32, #tpu.memory_space<vmem>>, vector<1x1xf32>
    tpu.vector_store %arg8[%c0_24, %c0_25], %41 {strides = array<i32>} : memref<1x1xf32, #tpu.memory_space<vmem>>, vector<1x1xf32>,
    return
  }
  func.func @transform_0(%arg0: i32) -> (i32, i32) {
    %c0_i32 = arith.constant 0 : i32
    %c0_i32_0 = arith.constant 0 : i32
    return %arg0, %c0_i32 : i32, i32
  }
  func.func @transform_1(%arg0: i32) -> (i32, i32) {
    %c0_i32 = arith.constant 0 : i32
    %c0_i32_0 = arith.constant 0 : i32
    %c0_i32_1 = arith.constant 0 : i32
    return %c0_i32, %c0_i32_0 : i32, i32
  }
  func.func @transform_2(%arg0: i32) -> (i32, i32) {
    %c0_i32 = arith.constant 0 : i32
    %c0_i32_0 = arith.constant 0 : i32
    %c0_i32_1 = arith.constant 0 : i32
    return %c0_i32, %c0_i32_0 : i32, i32
  }
  func.func @transform_3(%arg0: i32) -> (i32, i32) {
    %c0_i32 = arith.constant 0 : i32
    %c0_i32_0 = arith.constant 0 : i32
    %c0_i32_1 = arith.constant 0 : i32
    return %c0_i32, %c0_i32_0 : i32, i32
  }
  func.func @transform_4(%arg0: i32) -> (i32, i32) {
    %c0_i32 = arith.constant 0 : i32
    %c0_i32_0 = arith.constant 0 : i32
    %c0_i32_1 = arith.constant 0 : i32
    return %c0_i32, %c0_i32_0 : i32, i32
  }
  func.func @transform_5(%arg0: i32) -> (i32, i32) {
    %c0_i32 = arith.constant 0 : i32
    %c0_i32_0 = arith.constant 0 : i32
    %c0_i32_1 = arith.constant 0 : i32
    return %c0_i32, %c0_i32_0 : i32, i32
  }
  func.func @transform_6(%arg0: i32) -> (i32, i32) {
    %c0_i32 = arith.constant 0 : i32
    %c0_i32_0 = arith.constant 0 : i32
    %c0_i32_1 = arith.constant 0 : i32
    return %c0_i32, %c0_i32_0 : i32, i32
  }
  func.func @transform_7(%arg0: i32) -> (i32, i32) {
    %c0_i32 = arith.constant 0 : i32
    %c0_i32_0 = arith.constant 0 : i32
    %c0_i32_1 = arith.constant 0 : i32
    return %c0_i32, %c0_i32_0 : i32, i32
  }
}

</mosaic_0001>

<bundles_post_ra>
// kernel: tpu_custom_call.1
= control target key start
LH: loop header
LB: loop body
LE: loop exit
PB: predicated region body
PF: predicated region fallthrough
CT: control target
= control target key end

     0   :  { %s788_s0 = inlined_call_operand.vmem [shape: bf16[8,128], index: 0, kind: input, shape index: {}]   ;;  %s789_s1 = inlined_call_operand.vmem [shape: bf16[128,128], index: 1, kind: input, shape index: {}]   ;;  %s790_s2 = inlined_call_operand.vmem [shape: f32[1,128], index: 2, kind: input, shape index: {}]   ;;  %s791_s3 = inlined_call_operand.hbm [shape: bf16[128,128], index: 3, kind: input, shape index: {}]   ;;  %s792_s4 = inlined_call_operand.vmem [shape: f32[1,128], index: 4, kind: input, shape index: {}]   ;;  %s793_s5 = inlined_call_operand.vmem [shape: bf16[128,1], index: 5, kind: input, shape index: {}]   ;;  %s794_s6 = inlined_call_operand.<no memory space> [shape: f32[1,1], index: 6, kind: input, shape index: {}]   ;;  %s795_s7 = inlined_call_operand.hbm [shape: f32[1,1], index: 7, kind: output, shape index: {}]  }
   0x1   :  { %v12_v0 = vstv %s794_s6 }
   0x2   :  { %13 = vst [vmem:[#allocation2] sm:$0x1] %v12_v0 }
   0x3   :  { %14 = vsyncpa [#allocation4], 0 }
   0x4   :  { %15 = vsyncpa [#allocation5], 0  ;;  %s625_s26 = smov [#allocation3]   ;;  %s577_s30 = scalar_lea.hbm %s791_s3, 1024 }
   0x5   :  { %s27_s27 = sshll.u32 %s625_s26, 4  ;;  %p578_p0 = scmp.ne.s32.totalorder %s791_s3, %s577_s30  ;;  %s28_s27 = int_to_ptr.vmem [resolvable:$true] %s27_s27 }
   0x6   :  { %p581_p1 = scmp.lt.u32.totalorder %s577_s30, %s791_s3 }
   0x8   :  { %p583_p2 = pnand %p581_p1, %p578_p0 }
   0xa   :  { %586 = shalt.err (!%p583_p2)
}
   0xb   :  { %s587_s6 = scalar_lea.vmem %s28_s27, 1024  ;;  %p592_p4 = scmp.lt.s32.totalorder %s28_s27, %s28_s27 }
   0xc   :  { %p588_p3 = scmp.ne.s32.totalorder %s28_s27, %s587_s6  ;;  %p593_p5 = scmp.lt.s32.totalorder %s587_s6, %s587_s6 }
   0xe   :  { %p594_p6 = por %p593_p5, %p592_p4 }
  0x10   :  { %p595_p7 = pnand %p594_p6, %p588_p3 }
  0x12   :  { %598 = shalt.err (!%p595_p7)
}
  0x13   :  { %s626_s12 = smov 64   ;;  %s627_s13 = smov 4  }
  0x14   :  { %33 = dma.hbm_to_vmem [thread:$0]  %s791_s3, 1024, %s28_s27, [#allocation4], %s626_s12, %s626_s12, %s627_s13  }
  0x15   :  { %621 = dma.done.wait [#allocation4], 1024  }
  0x16   :  { %622 = vsyncadd [#allocation4], 4294966272  ;;  %v628_v1 = vmov 0.0   ;;  %vm629_vm0 = vmmov 0   ;;  %v549_v2 = vld [vmem:[%s789_s1] sm:$0xff]   ;;  %v550_v3 = vld [vmem:[%s789_s1 + $0x8] sm:$0xff]  }
  0x17   :  { %483 = vmatprep.subr.bf16.mxu0 %v628_v1  ;;  %499 = vmatprep.mubr.msk.bf16.mxu0 %vm629_vm0, %v628_v1  ;;  %v551_v4 = vld [vmem:[%s789_s1 + $0x10] sm:$0xff]   ;;  %v557_v5 = vld [vmem:[#allocation3] sm:$0xff]   ;;  %v552_v6 = vld [vmem:[%s789_s1 + $0x18] sm:$0xff]   ;;  %vm48_vm1 = vcmask 0   ;;  %vm402_vm2 = vcmask 7168  }
  0x18   :  { %503 = vmatprep.subr.bf16.mxu1 %v628_v1  ;;  %519 = vmatprep.mubr.msk.bf16.mxu1 %vm629_vm0, %v628_v1  ;;  %v558_v7 = vld [vmem:[#allocation3 + $0x8] sm:$0xff]   ;;  %v553_v8 = vld [vmem:[%s789_s1 + $0x20] sm:$0xff]   ;;  %v559_v9 = vld [vmem:[#allocation3 + $0x10] sm:$0xff]   ;;  %49 = vst.msk [vmem:[#allocation6] sm:$0x1] %vm48_vm1, %v628_v1 }
  0x19   :  { %484 = vmatpush3.bf16.msra.mxu0 %v549_v2  ;;  %504 = vmatpush3.bf16.msra.mxu1 %v557_v5  ;;  %v554_v10 = vld [vmem:[%s789_s1 + $0x28] sm:$0xff]   ;;  %v560_v11 = vld [vmem:[#allocation3 + $0x18] sm:$0xff]   ;;  %v555_v12 = vld [vmem:[%s789_s1 + $0x30] sm:$0xff]  }
  0x1a   :  { %485 = vmatprep.subr.bf16.mxu0 %v628_v1  ;;  %505 = vmatprep.subr.bf16.mxu1 %v628_v1  ;;  %v561_v13 = vld [vmem:[#allocation3 + $0x20] sm:$0xff]   ;;  %v556_v14 = vld [vmem:[%s789_s1 + $0x38] sm:$0xff]   ;;  %v562_v15 = vld [vmem:[#allocation3 + $0x28] sm:$0xff]  }
  0x1b   :  { %v50_v16 = vld [vmem:[%s788_s0] sm:$0xf]  ;;  %v563_v17 = vld [vmem:[#allocation3 + $0x30] sm:$0xff]   ;;  %v566_v20 = vld [vmem:[%s793_s5 + $0x8] sm:$0xff]  }
  0x1c   :  { %v564_v18 = vld [vmem:[#allocation3 + $0x38] sm:$0xff]   ;;  %v567_v21 = vld [vmem:[%s793_s5 + $0x10] sm:$0xff]   ;;  %v570_v24 = vld [vmem:[%s793_s5 + $0x28] sm:$0xff]  }
  0x1d   :  { %486 = vmatpush3.bf16.msra.mxu0 %v550_v3  ;;  %506 = vmatpush3.bf16.msra.mxu1 %v558_v7  ;;  %v565_v19 = vld [vmem:[%s793_s5] sm:$0xff]   ;;  %v568_v22 = vld [vmem:[%s793_s5 + $0x18] sm:$0xff]   ;;  %v571_v33 = vld [vmem:[%s793_s5 + $0x30] sm:$0xff]  }
  0x1e   :  { %487 = vmatprep.subr.bf16.mxu0 %v628_v1  ;;  %507 = vmatprep.subr.bf16.mxu1 %v628_v1  ;;  %v569_v23 = vld [vmem:[%s793_s5 + $0x20] sm:$0xff]   ;;  %v572_v34 = vld [vmem:[%s793_s5 + $0x38] sm:$0xff]  }
  0x1f   :  { %v428_v25 = vld [vmem:[%s790_s2] ss:$0 sm:$0xff]  ;;  %v401_v59 = vld [vmem:[#allocation6] sm:$0x1] }
  0x20   :  { %v437_v35 = vld [vmem:[%s792_s4] ss:$0 sm:$0xff]  ;;  %s630_s4 = smov [#allocation6]  }
  0x21   :  { %488 = vmatpush3.bf16.msra.mxu0 %v551_v4  ;;  %508 = vmatpush3.bf16.msra.mxu1 %v559_v9  ;;  %v446_v43 = vld [vmem:[#allocation2] ss:$0 sm:$0xff]  ;;  %s419_s5 = sshll.u32 %s630_s4, 4  ;;  %s420_s5 = int_to_ptr.vmem [resolvable:$true] %s419_s5 }
  0x22   :  { %489 = vmatprep.subr.bf16.mxu0 %v628_v1  ;;  %509 = vmatprep.subr.bf16.mxu1 %v628_v1  ;;  %s599_s25 = scalar_lea.vmem %s420_s5, 16  ;;  %s603_s26 = scalar_lea.vmem %s420_s5, 32 }
  0x23   :  { %p600_p8 = scmp.ne.s32.totalorder %s420_s5, %s599_s25  ;;  %p604_p9 = scmp.lt.s32.totalorder %s420_s5, %s420_s5 }
  0x24   :  { %p605_p10 = scmp.lt.s32.totalorder %s603_s26, %s599_s25 }
  0x25   :  { %490 = vmatpush3.bf16.msra.mxu0 %v552_v6  ;;  %510 = vmatpush3.bf16.msra.mxu1 %v560_v11 }
  0x26   :  { %491 = vmatprep.subr.bf16.mxu0 %v628_v1  ;;  %511 = vmatprep.subr.bf16.mxu1 %v628_v1  ;;  %p606_p11 = por %p605_p10, %p604_p9 }
  0x28   :  { %p607_p12 = pnand %p606_p11, %p600_p8 }
  0x29   :  { %492 = vmatpush3.bf16.msra.mxu0 %v553_v8  ;;  %512 = vmatpush3.bf16.msra.mxu1 %v561_v13 }
  0x2a   :  { %493 = vmatprep.subr.bf16.mxu0 %v628_v1  ;;  %513 = vmatprep.subr.bf16.mxu1 %v628_v1 }
  0x2d   :  { %494 = vmatpush3.bf16.msra.mxu0 %v554_v10  ;;  %514 = vmatpush3.bf16.msra.mxu1 %v562_v15 }
  0x2e   :  { %495 = vmatprep.subr.bf16.mxu0 %v628_v1  ;;  %515 = vmatprep.subr.bf16.mxu1 %v628_v1 }
  0x31   :  { %496 = vmatpush3.bf16.msra.mxu0 %v555_v12  ;;  %516 = vmatpush3.bf16.msra.mxu1 %v563_v17 }
  0x32   :  { %497 = vmatprep.subr.bf16.mxu0 %v628_v1  ;;  %517 = vmatprep.subr.bf16.mxu1 %v628_v1 }
  0x35   :  { %498 = vmatpush3.bf16.msra.mxu0 %v556_v14  ;;  %518 = vmatpush3.bf16.msra.mxu1 %v564_v18 }
  0x36   :  { %523 = vmatprep.subr.bf16.mxu0 %v628_v1 }
  0x38   :  { %500 = vmatmul.mubr.bf16.vlgmr.msra.gmra.mrb[0].mxu0 %v50_v16 }
  0x39   :  { %539 = vmatprep.mubr.msk.bf16.mxu0 %vm629_vm0, %v628_v1  ;;  %524 = vmatpush3.bf16.msra.mxu0 %v565_v19 }
  0x3a   :  { %525 = vmatprep.subr.bf16.mxu0 %v628_v1 }
  0x3d   :  { %526 = vmatpush3.bf16.msra.mxu0 %v566_v20 }
  0x3e   :  { %527 = vmatprep.subr.bf16.mxu0 %v628_v1 }
  0x41   :  { %528 = vmatpush3.bf16.msra.mxu0 %v567_v21 }
  0x42   :  { %529 = vmatprep.subr.bf16.mxu0 %v628_v1 }
  0x45   :  { %530 = vmatpush3.bf16.msra.mxu0 %v568_v22 }
  0x46   :  { %531 = vmatprep.subr.bf16.mxu0 %v628_v1 }
  0x49   :  { %532 = vmatpush3.bf16.msra.mxu0 %v569_v23 }
  0x4a   :  { %533 = vmatprep.subr.bf16.mxu0 %v628_v1 }
  0x4d   :  { %534 = vmatpush3.bf16.msra.mxu0 %v570_v24 }
  0x4e   :  { %535 = vmatprep.subr.bf16.mxu0 %v628_v1 }
  0x51   :  { %536 = vmatpush3.bf16.msra.mxu0 %v571_v33 }
  0x52   :  { %537 = vmatprep.subr.bf16.mxu0 %v628_v1 }
  0x55   :  { %538 = vmatpush3.bf16.msra.mxu0 %v572_v34 }
 0x10b   :  { %v156_v26 = vpop.f32.mrb[0].mxu0 }
 0x10c   :  { %v157_v27 = vadd.f32 %v428_v25, %v156_v26  ;;  %v501_v28 = vpop.f32.mrb[1].mxu0 }
 0x10d   :  { %v159_v29 = vpop.f32.mrb[2].mxu0 }
 0x10e   :  { %v162_v30 = vmax.f32 %v157_v27, 0.0  ;;  %v502_v31 = vpop.f32.mrb[3].mxu0 }
 0x110   :  { %v163_v32 = vpack.c.bf16 %v162_v30, %v162_v30 }
 0x112   :  { %520 = vmatmul.mubr.bf16.vlgmr.msra.gmra.mrb[0].mxu1 %v163_v32 }
 0x1e5   :  { %v269_v36 = vpop.f32.mrb[0].mxu1 }
 0x1e6   :  { %v270_v37 = vadd.f32 %v437_v35, %v269_v36  ;;  %v521_v38 = vpop.f32.mrb[1].mxu1 }
 0x1e7   :  { %v272_v39 = vpop.f32.mrb[2].mxu1 }
 0x1e8   :  { %v275_v40 = vmax.f32 %v270_v37, 0.0  ;;  %v522_v41 = vpop.f32.mrb[3].mxu1 }
 0x1ea   :  { %v276_v42 = vpack.c.bf16 %v275_v40, %v275_v40 }
 0x1ec   :  { %540 = vmatmul.mubr.bf16.vlgmr.msra.gmra.mrb[4].mxu0 %v276_v42 }
 0x2bf   :  { %v382_v44 = vpop.f32.mrb[4].mxu0 }
 0x2c0   :  { %v383_v45 = vadd.f32 %v446_v43, %v382_v44  ;;  %v541_v46 = vpop.f32.mrb[5].mxu0 }
 0x2c1   :  { %v385_v47 = vpop.f32.mrb[6].mxu0 }
 0x2c2   :  { %v455_v48 = vmul.f32 -1.442695, %v383_v45  ;;  %v542_v49 = vpop.f32.mrb[7].mxu0 }
 0x2c4   :  { %573 = vpow2.f32 %v455_v48 }
 0x2ce   :  { %v574_v50 = vpop.eup %573 }
 0x2cf   :  { %v391_v51 = vadd.f32 1.0, %v574_v50 }
 0x2d1   :  { %575 = vrcp.f32 %v391_v51 }
 0x2db   :  { %v576_v52 = vpop.eup %575 }
 0x2dc   :  { %v403_v53 = vsel %vm402_vm2, %v576_v52, 0.0 }
 0x2dd   :  { %v404_v54 = vrot.slane %v403_v53, 4 }
 0x2df   :  { %v405_v55 = vadd.f32 %v404_v54, %v403_v53 }
 0x2e1   :  { %v406_v56 = vrot.slane %v405_v55, 2 }
 0x2e3   :  { %v407_v57 = vadd.f32 %v406_v56, %v405_v55 }
 0x2e5   :  { %v408_v58 = vrot.slane %v407_v57, 1 }
 0x2e7   :  { %v409_v60 = vadd.f32 %v408_v58, %v407_v57 }
 0x2e9   :  { %v410_v61 = vadd.f32 %v409_v60, %v401_v59 }
 0x2eb   :  { %412 = vst.msk [vmem:[#allocation6] sm:$0x1] %vm48_vm1, %v410_v61 }
 0x2ec   :  { %610 = shalt.err (!%p607_p12)
}
 0x2ed   :  { %s611_s29 = scalar_lea.hbm %s795_s7, 16 }
 0x2ee   :  { %p612_p13 = scmp.ne.s32.totalorder %s795_s7, %s611_s29  ;;  %p615_p0 = scmp.lt.u32.totalorder %s611_s29, %s795_s7 }
 0x2f0   :  { %p617_p1 = pnand %p615_p0, %p612_p13 }
 0x2f2   :  { %620 = shalt.err (!%p617_p1)
}
 0x2f3   :  { %422 = dma.vmem_to_hbm [thread:$0]  %s420_s5, 16, %s795_s7, [#allocation5]  }
 0x2f4   :  { %623 = dma.done.wait [#allocation5], 16  }
 0x2f5   :  { %624 = vsyncadd [#allocation5], 4294967280 }
 0x2f6   :  { %426 = vsyncpa [#allocation4], 1 }
 0x2f7   :  { %427 = vsyncpa [#allocation5], 1 }

</bundles_post_ra>
